<compile_context>
chip_gen: v6e
topology: v6e:2x2x1
jax: 0.10.0
libtpu: 0.0.40
codegen_flags: <defaults>
</compile_context>

<pallas_src>
import jax
import jax.numpy as jnp
from jax.experimental import pallas as pl
from jax.experimental.pallas import tpu as pltpu


# ----------------------------- kernels --------------------------------------


def _ffn_kernel_f32out(x_ref, w1_ref, b1_ref, w2_ref, b2_ref, o_ref):
    """f32 output: accumulate directly into the VMEM-resident output block."""
    k = pl.program_id(1)

    @pl.when(k == 0)
    def _init():
        o_ref[...] = jnp.broadcast_to(
            b2_ref[...].astype(jnp.float32), o_ref.shape)

    h = jnp.dot(x_ref[...], w1_ref[...], preferred_element_type=jnp.float32)
    h = jnp.maximum(h + b1_ref[...].astype(jnp.float32), 0.0)
    o_ref[...] += jnp.dot(h.astype(w2_ref.dtype), w2_ref[...],
                          preferred_element_type=jnp.float32)


def _ffn_kernel_acc(x_ref, w1_ref, b1_ref, w2_ref, b2_ref, o_ref, acc_ref):
    """Generic path (e.g. bf16 output): f32 scratch accumulator, cast at end."""
    k = pl.program_id(1)

    @pl.when(k == 0)
    def _init():
        acc_ref[...] = jnp.broadcast_to(
            b2_ref[...].astype(jnp.float32), acc_ref.shape)

    h = jnp.dot(x_ref[...], w1_ref[...], preferred_element_type=jnp.float32)
    h = jnp.maximum(h + b1_ref[...].astype(jnp.float32), 0.0)
    acc_ref[...] += jnp.dot(h.astype(w2_ref.dtype), w2_ref[...],
                            preferred_element_type=jnp.float32)

    @pl.when(k == pl.num_programs(1) - 1)
    def _finalize():
        o_ref[...] = acc_ref[...].astype(o_ref.dtype)


# --------------------------- tile planning ----------------------------------


def _itemsize(dtype):
    return jnp.dtype(dtype).itemsize


def _sublane(dtype):
    return {4: 8, 2: 16, 1: 32}.get(_itemsize(dtype), 8)


def _round_up(x, m):
    return ((x + m - 1) // m) * m


def _tpu_vmem_info():
    """(physical VMEM bytes per core, assume-multiple-TensorCores?)."""
    try:
        vmem = int(pltpu.get_tpu_info().vmem_capacity_bytes)
    except Exception:
        # Unknown platform / old jax: assume v7x sizing (safe everywhere).
        return 64 << 20, True
    # 64 MiB/TC => v7x (2 TensorCores/chip); 128 MiB => v5e/v6e (1 TC).
    return vmem, vmem <= (64 << 20)


def _plan_bytes(tm, tf, d_model, isz, osz, use_scratch):
    """Approximate VMEM footprint of the pipelined tile plan."""
    b = 2 * tm * d_model * isz             # x row tile (double-buffered)
    b += 2 * tm * d_model * osz            # out row tile
    b += 2 * d_model * tf * isz            # W1 dff chunk
    b += 2 * tf * d_model * isz            # W2 dff chunk
    b += 2 * tf * 4 + 2 * d_model * 4      # b1 / b2 chunks
    b += tm * tf * (4 + isz)               # h (f32) + cast copy for 2nd matmul
    if use_scratch:
        b += tm * d_model * 4              # f32 accumulator scratch
    return b


def _choose_tiles(rows, d_model, dff, compute_dtype, out_dtype):
    isz = _itemsize(compute_dtype)
    osz = _itemsize(out_dtype)
    sub = _sublane(compute_dtype)
    use_scratch = jnp.dtype(out_dtype) != jnp.dtype(jnp.float32)

    vmem_cap, multi_core = _tpu_vmem_info()
    budget = int(0.70 * vmem_cap)          # headroom for compiler scratch

    # Row tile: big (target 1024) so each streamed weight byte is reused by many
    # rows; capped by the row count.  On multi-TC chips keep >= 2 row tiles so
    # the "parallel" axis shards across both cores (only when it leaves >= 256
    # rows/tile of weight reuse).
    tm_cap = min(1024, _round_up(max(rows, sub), sub))
    if multi_core and rows >= 2 * sub:
        half = _round_up(-(-rows // 2), sub)
        if half >= 256:
            tm_cap = min(tm_cap, half)
    tm_cap = max(tm_cap, sub)

    # dff tile candidates: largest first, 256-aligned (2x256x256 MXU on
    # v6e/v7x) with a 128 fallback; full dff when it is small.
    if dff <= 128:
        tf_candidates = [dff]
    else:
        tf_max = min(_round_up(dff, 256), 4096)
        tf_candidates = list(range(tf_max, 255, -256)) + [128]

    tm = tm_cap
    while True:
        fitting = [t for t in tf_candidates
                   if _plan_bytes(tm, t, d_model, isz, osz, use_scratch) <= budget]
        if fitting:
            best = fitting[0]
            # Prefer a tf that divides dff exactly (no padded tail) as long as
            # it does not more than double the number of k-steps.
            for t in fitting:
                if dff % t == 0 and -(-dff // t) <= 2 * (-(-dff // best)):
                    return tm, t, use_scratch, vmem_cap
            return tm, best, use_scratch, vmem_cap
        if tm <= sub:
            # Smallest plan even if above the nominal budget.
            return tm, tf_candidates[-1], use_scratch, vmem_cap
        tm = max(sub, _round_up(tm // 2, sub))


# ------------------------------ wrapper --------------------------------------


def ffn_pallas(x, w1, b1, w2, b2, *, compute_dtype=None,
               tm=None, tf=None, vmem_limit_bytes=None):
    """out = relu(x @ W1 + b1) @ W2 + b2.

    x: (batch, seq, d_model); w1: (d_model, dff); b1: (dff,);
    w2: (dff, d_model); b2: (d_model,).  Weights are stored transposed
    relative to PyTorch nn.Linear."""
    batch, seq, d_model = x.shape
    dff = w1.shape[1]
    rows = batch * seq
    out_dtype = x.dtype

    # bf16 MXU compute (~3-4x the f32 rate, half the weight DMA) with f32
    # accumulation when the caller hands us f32 tensors.
    if compute_dtype is None:
        compute_dtype = (jnp.bfloat16 if jnp.dtype(x.dtype) == jnp.float32
                         else x.dtype)

    tm_auto, tf_auto, use_scratch, vmem_cap = _choose_tiles(
        rows, d_model, dff, compute_dtype, out_dtype)
    tm = tm_auto if tm is None else tm
    tf = tf_auto if tf is None else tf

    x2d = x.reshape(rows, d_model).astype(compute_dtype)
    w1c = w1.astype(compute_dtype)
    w2c = w2.astype(compute_dtype)
    b1r = b1.reshape(1, dff)
    b2r = b2.reshape(1, d_model)

    # Pad dff (weights / b1 only) when the chunk does not divide it; zero
    # columns/rows contribute exactly zero to the output.
    dff_p = _round_up(dff, tf)
    if dff_p != dff:
        pad = dff_p - dff
        w1c = jnp.pad(w1c, ((0, 0), (0, pad)))
        b1r = jnp.pad(b1r, ((0, 0), (0, pad)))
        w2c = jnp.pad(w2c, ((0, pad), (0, 0)))
    n_k = dff_p // tf

    # Rows are NOT padded: cdiv grid + Pallas edge-block masking of OOB writes
    # (rows are independent so the garbage lanes of the last tile are harmless).
    grid = (pl.cdiv(rows, tm), n_k)

    if vmem_limit_bytes is None:
        plan = _plan_bytes(tm, tf, d_model, _itemsize(compute_dtype),
                           _itemsize(out_dtype), use_scratch)
        vmem_limit_bytes = int(min(vmem_cap,
                                   max(32 << 20, int(plan * 1.5) + (4 << 20))))

    in_specs = [
        pl.BlockSpec((tm, d_model), lambda i, k: (i, 0)),   # x row tile
        pl.BlockSpec((d_model, tf), lambda i, k: (0, k)),   # W1 dff chunk
        pl.BlockSpec((1, tf),       lambda i, k: (0, k)),   # b1 dff chunk
        pl.BlockSpec((tf, d_model), lambda i, k: (k, 0)),   # W2 dff chunk
        pl.BlockSpec((1, d_model),  lambda i, k: (0, 0)),   # b2 (full)
    ]
    out_spec = pl.BlockSpec((tm, d_model), lambda i, k: (i, 0))

    if use_scratch:
        kernel = _ffn_kernel_acc
        scratch = [pltpu.VMEM((tm, d_model), jnp.float32)]
    else:
        kernel = _ffn_kernel_f32out
        scratch = []

    out2d = pl.pallas_call(
        kernel,
        out_shape=jax.ShapeDtypeStruct((rows, d_model), out_dtype),
        grid=grid,
        in_specs=in_specs,
        out_specs=out_spec,
        scratch_shapes=scratch,
        compiler_params=pltpu.CompilerParams(
            dimension_semantics=("parallel", "arbitrary"),
            vmem_limit_bytes=vmem_limit_bytes),
    )(x2d, w1c, b1r, w2c, b2r)

    return out2d.reshape(batch, seq, d_model)


def ffn_ref(x, w1, b1, w2, b2):
    h = jnp.maximum(jnp.einsum("bsd,df->bsf", x, w1) + b1, 0.0)
    return jnp.einsum("bsf,fd->bsd", h, w2) + b2


if __name__ == "__main__":
    # Small shapes consistent with the module: batch=2, seq=8, d_model=32, dff=64
    batch, seq, d_model, dff = 2, 8, 32, 64

    key = jax.random.PRNGKey(0)
    kx, k1, kb1, k2, kb2 = jax.random.split(key, 5)

    x = jax.random.normal(kx, (batch, seq, d_model), dtype=jnp.float32)
    w1 = jax.random.normal(k1, (d_model, dff), dtype=jnp.float32) * 0.1
    b1 = jax.random.normal(kb1, (dff,), dtype=jnp.float32) * 0.1
    w2 = jax.random.normal(k2, (dff, d_model), dtype=jnp.float32) * 0.1
    b2 = jax.random.normal(kb2, (d_model,), dtype=jnp.float32) * 0.1

    expected = ffn_ref(x, w1, b1, w2, b2)

    # Pure-f32 MXU path (tight tolerance vs. the f32 reference).
    out_f32 = jax.block_until_ready(
        ffn_pallas(x, w1, b1, w2, b2, compute_dtype=jnp.float32))
    assert out_f32.shape == (batch, seq, d_model)
    assert jnp.allclose(out_f32, expected, atol=1e-4, rtol=1e-4), \
        "f32 path mismatch vs reference"

    # Default perf path: bf16 MXU compute with f32 accumulation.
    out = jax.block_until_ready(ffn_pallas(x, w1, b1, w2, b2))
    assert out.shape == (batch, seq, d_model)
    assert jnp.allclose(out, expected, atol=3e-2, rtol=3e-2), \
        "bf16 path mismatch vs reference"

    print("KERNEL_OK")
</pallas_src>

<mosaic_0001>
module attributes {stable_mosaic.version = 11 : i64} {
  func.func @_ffn_kernel_f32out(%arg0: i32, %arg1: i32, %arg2: memref<16x32xf32, #tpu.memory_space<vmem>>, %arg3: memref<32x64xf32, #tpu.memory_space<vmem>>, %arg4: memref<1x64xf32, #tpu.memory_space<vmem>>, %arg5: memref<64x32xf32, #tpu.memory_space<vmem>>, %arg6: memref<1x32xf32, #tpu.memory_space<vmem>>, %arg7: memref<16x32xf32, #tpu.memory_space<vmem>>) attributes {dimension_semantics = [#tpu.dimension_semantics<parallel>, #tpu.dimension_semantics<arbitrary>], iteration_bounds = array<i64: 1, 1>, scalar_prefetch = 0 : i64, scratch_operands = 0 : i64, tpu.core_type = #tpu.core_type<tc>, window_params = [{transform_indices = @transform_0, window_bounds = array<i64: 16, 32>}, {transform_indices = @transform_1, window_bounds = array<i64: 32, 64>}, {transform_indices = @transform_2, window_bounds = array<i64: 1, 64>}, {transform_indices = @transform_3, window_bounds = array<i64: 64, 32>}, {pipeline_mode = #tpu.pipeline_mode<synchronous>, transform_indices = @transform_4, window_bounds = array<i64: 1, 32>}, {transform_indices = @transform_5, window_bounds = array<i64: 16, 32>}]} {
    %c0_i32 = arith.constant 0 : i32
    %0 = arith.cmpi eq, %arg1, %c0_i32 : i32
    %1 = arith.extui %0 : i1 to i32
    %c0_i32_0 = arith.constant 0 : i32
    %2 = arith.cmpi ne, %1, %c0_i32_0 : i32
    scf.if %2 {
      %c0_14 = arith.constant 0 : index
      %c0_15 = arith.constant 0 : index
      %16 = vector.load %arg6[%c0_14, %c0_15] : memref<1x32xf32, #tpu.memory_space<vmem>>, vector<1x32xf32>
      %17 = vector.shape_cast %16 : vector<1x32xf32> to vector<1x32xf32>
      %18 = vector.broadcast %17 : vector<1x32xf32> to vector<16x32xf32>
      %c0_16 = arith.constant 0 : index
      %c0_17 = arith.constant 0 : index
      %19 = vector.load %arg7[%c0_16, %c0_17] : memref<16x32xf32, #tpu.memory_space<vmem>>, vector<16x32xf32>
      tpu.vector_store %arg7[%c0_16, %c0_17], %18 {strides = array<i32>} : memref<16x32xf32, #tpu.memory_space<vmem>>, vector<16x32xf32>,
    } else {
    }
    %c0 = arith.constant 0 : index
    %c0_1 = arith.constant 0 : index
    %3 = vector.load %arg2[%c0, %c0_1] : memref<16x32xf32, #tpu.memory_space<vmem>>, vector<16x32xf32>
    %c0_2 = arith.constant 0 : index
    %c0_3 = arith.constant 0 : index
    %4 = vector.load %arg3[%c0_2, %c0_3] : memref<32x64xf32, #tpu.memory_space<vmem>>, vector<32x64xf32>
    %cst = arith.constant dense<0.000000e+00> : vector<16x64xf32>
    %5 = tpu.matmul %3, %4, %cst {dimension_numbers = #tpu.dot_dimension_numbers<[1], [0], [0], [1], [0, 0, 1, 1], [], []>} : vector<16x32xf32>, vector<32x64xf32>, vector<16x64xf32> -> vector<16x64xf32>
    %c0_4 = arith.constant 0 : index
    %c0_5 = arith.constant 0 : index
    %6 = vector.load %arg4[%c0_4, %c0_5] : memref<1x64xf32, #tpu.memory_space<vmem>>, vector<1x64xf32>
    %7 = vector.broadcast %6 : vector<1x64xf32> to vector<16x64xf32>
    %8 = arith.addf %5, %7 : vector<16x64xf32>
    %cst_6 = arith.constant 0.000000e+00 : f32
    %9 = vector.broadcast %cst_6 : f32 to vector<16x64xf32>
    %10 = arith.maximumf %8, %9 : vector<16x64xf32>
    %c0_7 = arith.constant 0 : index
    %c0_8 = arith.constant 0 : index
    %11 = vector.load %arg7[%c0_7, %c0_8] : memref<16x32xf32, #tpu.memory_space<vmem>>, vector<16x32xf32>
    %c0_9 = arith.constant 0 : index
    %c0_10 = arith.constant 0 : index
    %12 = vector.load %arg5[%c0_9, %c0_10] : memref<64x32xf32, #tpu.memory_space<vmem>>, vector<64x32xf32>
    %cst_11 = arith.constant dense<0.000000e+00> : vector<16x32xf32>
    %13 = tpu.matmul %10, %12, %cst_11 {dimension_numbers = #tpu.dot_dimension_numbers<[1], [0], [0], [1], [0, 0, 1, 1], [], []>} : vector<16x64xf32>, vector<64x32xf32>, vector<16x32xf32> -> vector<16x32xf32>
    %14 = arith.addf %11, %13 : vector<16x32xf32>
    %c0_12 = arith.constant 0 : index
    %c0_13 = arith.constant 0 : index
    %15 = vector.load %arg7[%c0_12, %c0_13] : memref<16x32xf32, #tpu.memory_space<vmem>>, vector<16x32xf32>
    tpu.vector_store %arg7[%c0_12, %c0_13], %14 {strides = array<i32>} : memref<16x32xf32, #tpu.memory_space<vmem>>, vector<16x32xf32>,
    return
  }
  func.func @transform_0(%arg0: i32, %arg1: i32) -> (i32, i32) {
    %c0_i32 = arith.constant 0 : i32
    %c0_i32_0 = arith.constant 0 : i32
    return %arg0, %c0_i32 : i32, i32
  }
  func.func @transform_1(%arg0: i32, %arg1: i32) -> (i32, i32) {
    %c0_i32 = arith.constant 0 : i32
    %c0_i32_0 = arith.constant 0 : i32
    return %c0_i32, %arg1 : i32, i32
  }
  func.func @transform_2(%arg0: i32, %arg1: i32) -> (i32, i32) {
    %c0_i32 = arith.constant 0 : i32
    %c0_i32_0 = arith.constant 0 : i32
    return %c0_i32, %arg1 : i32, i32
  }
  func.func @transform_3(%arg0: i32, %arg1: i32) -> (i32, i32) {
    %c0_i32 = arith.constant 0 : i32
    %c0_i32_0 = arith.constant 0 : i32
    return %arg1, %c0_i32 : i32, i32
  }
  func.func @transform_4(%arg0: i32, %arg1: i32) -> (i32, i32) {
    %c0_i32 = arith.constant 0 : i32
    %c0_i32_0 = arith.constant 0 : i32
    %c0_i32_1 = arith.constant 0 : i32
    return %c0_i32, %c0_i32_0 : i32, i32
  }
  func.func @transform_5(%arg0: i32, %arg1: i32) -> (i32, i32) {
    %c0_i32 = arith.constant 0 : i32
    %c0_i32_0 = arith.constant 0 : i32
    return %arg0, %c0_i32 : i32, i32
  }
}

</mosaic_0001>

<bundles_post_ra>
// kernel: tpu_custom_call.1
= control target key start
LH: loop header
LB: loop body
LE: loop exit
PB: predicated region body
PF: predicated region fallthrough
CT: control target
= control target key end

     0   :  { %vm32_vm0 = vcmask 261120   ;;  %s411_s0 = inlined_call_operand.vmem [shape: f32[16,32], index: 0, kind: input, shape index: {}]   ;;  %s412_s1 = inlined_call_operand.vmem [shape: f32[32,64], index: 1, kind: input, shape index: {}]   ;;  %s413_s2 = inlined_call_operand.vmem [shape: f32[1,64], index: 2, kind: input, shape index: {}]   ;;  %s414_s3 = inlined_call_operand.vmem [shape: f32[64,32], index: 3, kind: input, shape index: {}]   ;;  %s415_s4 = inlined_call_operand.vmem [shape: f32[1,32], index: 4, kind: input, shape index: {}]   ;;  %s416_s5 = inlined_call_operand.hbm [shape: f32[16,32], index: 5, kind: output, shape index: {}]  }
   0x1   :  { %v40_v0 = vld [vmem:[%s412_s1 + $0x18] sm:$0xff]  ;;  %v39_v1 = vld [vmem:[%s412_s1 + $0x10] sm:$0xff]  ;;  %v35_v2 = vld [vmem:[%s411_s0] sm:$0xff] }
   0x2   :  { %266 = vmatprep.subr.mxu0 %v40_v0  ;;  %v38_v3 = vld [vmem:[%s412_s1 + $0x8] sm:$0xff]  ;;  %274 = vmatprep.mubr.msk.f32.mxu0 %vm32_vm0, %v35_v2  ;;  %v141_v4 = vld [vmem:[%s414_s3 + $0x38] sm:$0xff]  ;;  %v140_v5 = vld [vmem:[%s414_s3 + $0x30] sm:$0xff] }
   0x3   :  { %267 = vmatpush3.msra.mxu0 %v40_v0  ;;  %277 = vmatprep.subr.mxu1 %v141_v4 }
   0x4   :  { %268 = vmatprep.subr.mxu0 %v39_v1 }
   0x5   :  { %10 = vsyncpa [#allocation3], 0  ;;  %269 = vmatpush3.msra.mxu0 %v39_v1  ;;  %v37_v6 = vld [vmem:[%s412_s1] sm:$0xff]  ;;  %278 = vmatpush3.msra.mxu1 %v141_v4  ;;  %v139_v7 = vld [vmem:[%s414_s3 + $0x28] sm:$0xff]  ;;  %vm142_vm1 = vcmask 523264  }
   0x6   :  { %270 = vmatprep.subr.mxu0 %v38_v3  ;;  %279 = vmatprep.subr.mxu1 %v140_v5  ;;  %v36_v8 = vld [vmem:[%s411_s0 + $0x8] sm:$0xff]  ;;  %v138_v9 = vld [vmem:[%s414_s3 + $0x20] sm:$0xff]  ;;  %v137_v10 = vld [vmem:[%s414_s3 + $0x18] sm:$0xff] }
   0x7   :  { %271 = vmatpush3.msra.mxu0 %v38_v3  ;;  %280 = vmatpush3.msra.mxu1 %v140_v5  ;;  %v136_v11 = vld [vmem:[%s414_s3 + $0x10] sm:$0xff]  ;;  %v135_v12 = vld [vmem:[%s414_s3 + $0x8] sm:$0xff]  ;;  %v134_v13 = vld [vmem:[%s414_s3] sm:$0xff]  ;;  %s321_s3 = smov [#allocation2]  }
   0x8   :  { %272 = vmatprep.subr.mxu0 %v37_v6  ;;  %281 = vmatprep.subr.mxu1 %v139_v7  ;;  %v244_v14 = vld [vmem:[%s415_s4] ss:$0 sm:$0xff]  ;;  %s233_s4 = sshll.u32 %s321_s3, 4  ;;  %s234_s4 = int_to_ptr.vmem [resolvable:$true] %s233_s4 }
   0x9   :  { %273 = vmatpush3.msra.mxu0 %v37_v6  ;;  %282 = vmatpush3.msra.mxu1 %v139_v7  ;;  %34 = vst.msk [vmem:[#allocation2 + $0x8] sm:$0xff] %vm32_vm0, %v244_v14  ;;  %33 = vst.msk [vmem:[#allocation2] sm:$0xff] %vm32_vm0, %v244_v14  ;;  %v245_v15 = vld [vmem:[%s413_s2] ss:$0 sm:$0xff]  ;;  %s299_s2 = scalar_lea.vmem %s234_s4, 256  ;;  %p304_p1 = scmp.lt.s32.totalorder %s234_s4, %s234_s4 }
   0xa   :  { %275 = vmatmul.mubr.msk.f32.vlgmr.msra.gmra.mxu0 %vm32_vm0, %v36_v8  ;;  %283 = vmatprep.subr.mxu1 %v138_v9  ;;  %p300_p0 = scmp.ne.s32.totalorder %s234_s4, %s299_s2  ;;  %p305_p2 = scmp.lt.s32.totalorder %s299_s2, %s299_s2 }
   0xb   :  { %284 = vmatpush3.msra.mxu1 %v138_v9 }
   0xc   :  { %285 = vmatprep.subr.mxu1 %v137_v10  ;;  %p306_p3 = por %p305_p2, %p304_p1 }
   0xd   :  { %286 = vmatpush3.msra.mxu1 %v137_v10 }
   0xe   :  { %287 = vmatprep.subr.mxu1 %v136_v11  ;;  %p307_p4 = pnand %p306_p3, %p300_p0 }
   0xf   :  { %288 = vmatpush3.msra.mxu1 %v136_v11 }
  0x10   :  { %289 = vmatprep.subr.mxu1 %v135_v12  ;;  %v133_v22 = vld [vmem:[#allocation2 + $0x8] sm:$0xff]  ;;  %v132_v24 = vld [vmem:[#allocation2] sm:$0xff] }
  0x11   :  { %290 = vmatpush3.msra.mxu1 %v135_v12 }
  0x12   :  { %291 = vmatprep.subr.mxu1 %v134_v13 }
  0x13   :  { %292 = vmatpush3.msra.mxu1 %v134_v13 }
  0xca   :  { %v276_v16 = vpop.f32.mrf.mxu0 }
  0xcb   :  { %v127_v17 = vadd.f32 %v276_v16, %v245_v15 }
  0xcc   :  { %v121_v18 = vpop.f32.mrf.mxu0 }
  0xcd   :  { %v122_v19 = vadd.f32 %v245_v15, %v121_v18  ;;  %v131_v21 = vmax.f32 %v127_v17, 0.0 }
  0xcf   :  { %v130_v20 = vmax.f32 %v122_v19, 0.0 }
  0xd1   :  { %293 = vmatprep.mubr.msk.f32.mxu1 %vm142_vm1, %v130_v20 }
  0xd2   :  { %294 = vmatmul.mubr.msk.f32.vlgmr.msra.gmra.mxu1 %vm142_vm1, %v131_v21 }
 0x192   :  { %v295_v23 = vpop.f32.mrf.mxu1 }
 0x193   :  { %v225_v25 = vadd.f32 %v295_v23, %v133_v22 }
 0x194   :  { %v215_v26 = vpop.f32.mrf.mxu1 }
 0x195   :  { %227 = vst.msk [vmem:[#allocation2 + $0x8] sm:$0xff] %vm32_vm0, %v225_v25  ;;  %v224_v27 = vadd.f32 %v215_v26, %v132_v24 }
 0x197   :  { %226 = vst.msk [vmem:[#allocation2] sm:$0xff] %vm32_vm0, %v224_v27 }
 0x198   :  { %310 = shalt.err (!%p307_p4)
}
 0x199   :  { %s322_s23 = smov 128   ;;  %s323_s24 = smov 8  }
 0x19a   :  { %239 = dma.vmem_to_hbm [thread:$0]  %s234_s4, 256, %s416_s5, [#allocation3], %s322_s23, %s322_s23, %s323_s24  }
 0x19b   :  { %319 = dma.done.wait [#allocation3], 256  }
 0x19c   :  { %320 = vsyncadd [#allocation3], 4294967040 }
 0x19d   :  { %243 = vsyncpa [#allocation3], 1 }

</bundles_post_ra>
